<compile_context>
chip_gen: v7x
topology: tpu7x:2x2x1
jax: 0.10.0
libtpu: 0.0.40
codegen_flags: <defaults>
</compile_context>

<pallas_src>
import functools

import jax
import jax.numpy as jnp
from jax.experimental import pallas as pl
from jax.experimental.pallas import tpu as pltpu

HIDDEN = 200        # logical hidden width of the PyTorch module
HIDDEN_PAD = 256    # padded to a multiple of the 128-lane width
OUT_PAD = 8         # final out dim padded 1 -> 8 (aligned sublane tile)


def _round_up(x, m):
    return ((x + m - 1) // m) * m


def _round_down(x, m):
    return (x // m) * m


def reward_mlp_kernel(x_ref,
                      w1_ref, b1_ref,
                      w2_ref, b2_ref,
                      w3_ref, b3_ref,
                      w4_ref, b4_ref,
                      o_ref,
                      *, bf16_epilogue=True):
    """All refs are VMEM tiles.

    x_ref : (bt, d_in)        f32   natural layout, batch on sublanes
    wK    : (in_pad, out_pad) bf16  pre-transposed [in, out], zero-padded
    bK    : (1, out_pad)      f32
    o_ref : (bt, 1)           f32   reward column
    """
    x = x_ref[...].astype(jnp.bfloat16)          # cast in-kernel (no extra HBM pass)

    def layer(h, w_ref, b_ref):
        acc = jnp.dot(h, w_ref[...], preferred_element_type=jnp.float32)
        if bf16_epilogue:
            # v6e/v7x: packed bf16 bias+ReLU halves VPU work / intermediates.
            b = b_ref[...].astype(jnp.bfloat16)
            return jnp.maximum(acc.astype(jnp.bfloat16) + b, 0)
        # v5e path: f32 epilogue (no bf16 VPU), cast once for the next matmul.
        return jnp.maximum(acc + b_ref[...], 0.0).astype(jnp.bfloat16)

    h = layer(x, w1_ref, b1_ref)                 # Linear(d_in -> 200) + ReLU
    h = layer(h, w2_ref, b2_ref)                 # Linear(200 -> 200) + ReLU
    h = layer(h, w3_ref, b3_ref)                 # Linear(200 -> 200) + ReLU
    # Linear(200 -> 1), no activation.  Columns 1..7 are zero padding; store
    # only the useful column (4 B/sample writeback).
    out = jnp.dot(h, w4_ref[...], preferred_element_type=jnp.float32) + b4_ref[...]
    o_ref[...] = out[:, :1].astype(o_ref.dtype)


@functools.partial(jax.jit, static_argnames=("batch_tile", "bf16_epilogue"))
def reward_mlp_forward(x, kparams, *, batch_tile=2048, bf16_epilogue=True):
    """x: [B, d_in] float32. kparams: output of pad_params_for_kernel.
    Returns [B, 1] float32."""
    B, d_in = x.shape
    assert kparams["w1"].shape == (d_in, HIDDEN_PAD)

    # ---- batch tiling (static) ------------------------------------------
    # Enforce bt % 128 == 0 (lane-aligned x / out blocks), clamp to the batch,
    # balance tiles across grid steps, and use >=2 "parallel" steps whenever
    # there is enough work so both v7x TensorCores run.
    bt = max(128, _round_down(batch_tile, 128))
    b_ceil = _round_up(B, 128)
    bt = min(bt, b_ceil)
    steps = pl.cdiv(b_ceil, bt)
    if b_ceil >= 512:
        steps = max(steps, 2)
    bt = _round_up(pl.cdiv(b_ceil, steps), 128)
    b_pad = _round_up(B, bt)
    grid = (b_pad // bt,)

    # Pad the batch only when needed (rows are independent; padding is sliced
    # away below).  No transpose / dtype pass over x.
    if b_pad != B:
        x = jnp.pad(x, ((0, b_pad - B), (0, 0)))

    w1, b1 = kparams["w1"], kparams["b1"]
    w2, b2 = kparams["w2"], kparams["b2"]
    w3, b3 = kparams["w3"], kparams["b3"]
    w4, b4 = kparams["w4"], kparams["b4"]

    # Weights/biases: full-extent blocks, constant block index -> VMEM-resident.
    full = lambda arr: pl.BlockSpec(arr.shape, lambda i: (0, 0))

    kernel = functools.partial(reward_mlp_kernel, bf16_epilogue=bf16_epilogue)

    out = pl.pallas_call(
        kernel,
        out_shape=jax.ShapeDtypeStruct((b_pad, 1), jnp.float32),
        grid_spec=pltpu.PrefetchScalarGridSpec(
            num_scalar_prefetch=0,
            grid=grid,
            in_specs=[
                pl.BlockSpec((bt, d_in), lambda i: (i, 0)),   # x tile, natural layout
                full(w1), full(b1),
                full(w2), full(b2),
                full(w3), full(b3),
                full(w4), full(b4),
            ],
            out_specs=pl.BlockSpec((bt, 1), lambda i: (i, 0)),
        ),
        compiler_params=pltpu.CompilerParams(
            dimension_semantics=("parallel",),
            # Only needed past bt=2048 (v5e scoped-VMEM default is 16 MiB).
            vmem_limit_bytes=(32 * 1024 * 1024 if bt > 2048 else None)),
    )(x, w1, b1, w2, b2, w3, b3, w4, b4)

    # Drop batch padding, return [B, 1].
    return out[:B].astype(x.dtype)


def init_params(key, z, a, hidden=HIDDEN):
    """PyTorch-style nn.Linear init: W, b ~ U(-1/sqrt(fan_in), 1/sqrt(fan_in)).
    Weights in the native PyTorch [out_features, in_features] layout."""
    d_in = z + a
    dims = [(hidden, d_in), (hidden, hidden), (hidden, hidden), (1, hidden)]
    params = {}
    for idx, (fo, fi) in enumerate(dims, start=1):
        key, kw, kb = jax.random.split(key, 3)
        bound = 1.0 / jnp.sqrt(jnp.float32(fi))
        params[f"w{idx}"] = jax.random.uniform(
            kw, (fo, fi), jnp.float32, minval=-bound, maxval=bound)
        params[f"b{idx}"] = jax.random.uniform(
            kb, (fo,), jnp.float32, minval=-bound, maxval=bound)
    return params


def pad_params_for_kernel(params):
    """Transpose PyTorch [out, in] weights to [in, out], zero-pad hidden
    200->256 and final out 1->8, cast weights to bf16 (matmul inputs).  Biases
    stay f32 rows (1, out_pad) and are cast in-kernel if the bf16 epilogue is
    used.  Zero padding leaves the math unchanged (padded activations are
    ReLU(0)=0 and contribute nothing downstream)."""
    d_in = params["w1"].shape[1]

    def pad_wT(w, in_pad, out_pad):
        fo, fi = w.shape                      # PyTorch [out, in]
        wT = w.T                              # -> [in, out]
        return jnp.pad(wT, ((0, in_pad - fi), (0, out_pad - fo))).astype(jnp.bfloat16)

    def pad_b(b, out_pad):
        return jnp.pad(b, (0, out_pad - b.shape[0])).reshape(1, out_pad).astype(jnp.float32)

    return {
        "w1": pad_wT(params["w1"], d_in, HIDDEN_PAD),
        "b1": pad_b(params["b1"], HIDDEN_PAD),
        "w2": pad_wT(params["w2"], HIDDEN_PAD, HIDDEN_PAD),
        "b2": pad_b(params["b2"], HIDDEN_PAD),
        "w3": pad_wT(params["w3"], HIDDEN_PAD, HIDDEN_PAD),
        "b3": pad_b(params["b3"], HIDDEN_PAD),
        "w4": pad_wT(params["w4"], HIDDEN_PAD, OUT_PAD),
        "b4": pad_b(params["b4"], OUT_PAD),
    }


def reward_mlp_reference(x, params, *, bf16_epilogue=True):
    """Pure-JAX reference mirroring the kernel's numerics (bf16 matmul inputs,
    f32 accumulation, bf16 or f32 epilogue), using unpadded PyTorch-layout
    params."""
    def linear(h, w, b):
        acc = jnp.dot(h.astype(jnp.bfloat16), w.T.astype(jnp.bfloat16),
                      preferred_element_type=jnp.float32)
        return acc, b

    def layer(h, w, b):
        acc, b = linear(h, w, b)
        if bf16_epilogue:
            return jnp.maximum(acc.astype(jnp.bfloat16) + b.astype(jnp.bfloat16),
                               0).astype(jnp.float32)
        return jnp.maximum(acc + b, 0.0)

    h = layer(x, params["w1"], params["b1"])
    h = layer(h, params["w2"], params["b2"])
    h = layer(h, params["w3"], params["b3"])
    acc, b4 = linear(h, params["w4"], params["b4"])
    return acc + b4


if __name__ == "__main__":
    # Small shapes consistent with the module: z=24 latent dims, a=8 action dims.
    z, a = 24, 8                 # d_in = 32
    B = 16                       # batch of (z, a) pairs
    key = jax.random.PRNGKey(0)
    key, kx = jax.random.split(key)

    params = init_params(key, z, a)
    kparams = pad_params_for_kernel(params)
    x = jax.random.normal(kx, (B, z + a), dtype=jnp.float32)

    out = reward_mlp_forward(x, kparams, batch_tile=2048)
    out = jax.block_until_ready(out)

    ref = reward_mlp_reference(x, params)
    assert out.shape == (B, 1), out.shape
    # bf16 matmul/epilogue numerics: allow ~1e-2 vs. the mirroring reference.
    assert jnp.allclose(out, ref, atol=1e-2, rtol=1e-2), \
        float(jnp.max(jnp.abs(out - ref)))

    print("KERNEL_OK")
</pallas_src>

<mosaic_0001>
module attributes {stable_mosaic.version = 11 : i64} {
  func.func @reward_mlp_kernel(%arg0: i32, %arg1: memref<128x32xf32, #tpu.memory_space<vmem>>, %arg2: memref<32x256xbf16, #tpu.memory_space<vmem>>, %arg3: memref<1x256xf32, #tpu.memory_space<vmem>>, %arg4: memref<256x256xbf16, #tpu.memory_space<vmem>>, %arg5: memref<1x256xf32, #tpu.memory_space<vmem>>, %arg6: memref<256x256xbf16, #tpu.memory_space<vmem>>, %arg7: memref<1x256xf32, #tpu.memory_space<vmem>>, %arg8: memref<256x8xbf16, #tpu.memory_space<vmem>>, %arg9: memref<1x8xf32, #tpu.memory_space<vmem>>, %arg10: memref<128x1xf32, #tpu.memory_space<vmem>>) attributes {dimension_semantics = [#tpu.dimension_semantics<parallel>], iteration_bounds = array<i64: 1>, scalar_prefetch = 0 : i64, scratch_operands = 0 : i64, tpu.core_type = #tpu.core_type<tc>, window_params = [{transform_indices = @transform_0, window_bounds = array<i64: 128, 32>}, {pipeline_mode = #tpu.pipeline_mode<synchronous>, transform_indices = @transform_1, window_bounds = array<i64: 32, 256>}, {pipeline_mode = #tpu.pipeline_mode<synchronous>, transform_indices = @transform_2, window_bounds = array<i64: 1, 256>}, {pipeline_mode = #tpu.pipeline_mode<synchronous>, transform_indices = @transform_3, window_bounds = array<i64: 256, 256>}, {pipeline_mode = #tpu.pipeline_mode<synchronous>, transform_indices = @transform_4, window_bounds = array<i64: 1, 256>}, {pipeline_mode = #tpu.pipeline_mode<synchronous>, transform_indices = @transform_5, window_bounds = array<i64: 256, 256>}, {pipeline_mode = #tpu.pipeline_mode<synchronous>, transform_indices = @transform_6, window_bounds = array<i64: 1, 256>}, {pipeline_mode = #tpu.pipeline_mode<synchronous>, transform_indices = @transform_7, window_bounds = array<i64: 256, 8>}, {pipeline_mode = #tpu.pipeline_mode<synchronous>, transform_indices = @transform_8, window_bounds = array<i64: 1, 8>}, {transform_indices = @transform_9, window_bounds = array<i64: 128, 1>}]} {
    %c0 = arith.constant 0 : index
    %c0_0 = arith.constant 0 : index
    %0 = vector.load %arg1[%c0, %c0_0] : memref<128x32xf32, #tpu.memory_space<vmem>>, vector<128x32xf32>
    %1 = arith.truncf %0 : vector<128x32xf32> to vector<128x32xbf16>
    %c0_1 = arith.constant 0 : index
    %c0_2 = arith.constant 0 : index
    %2 = vector.load %arg2[%c0_1, %c0_2] : memref<32x256xbf16, #tpu.memory_space<vmem>>, vector<32x256xbf16>
    %cst = arith.constant dense<0.000000e+00> : vector<128x256xf32>
    %3 = tpu.matmul %1, %2, %cst {dimension_numbers = #tpu.dot_dimension_numbers<[1], [0], [0], [1], [0, 0, 1, 1], [], []>} : vector<128x32xbf16>, vector<32x256xbf16>, vector<128x256xf32> -> vector<128x256xf32>
    %c0_3 = arith.constant 0 : index
    %c0_4 = arith.constant 0 : index
    %4 = vector.load %arg3[%c0_3, %c0_4] : memref<1x256xf32, #tpu.memory_space<vmem>>, vector<1x256xf32>
    %5 = arith.truncf %4 : vector<1x256xf32> to vector<1x256xbf16>
    %6 = arith.truncf %3 : vector<128x256xf32> to vector<128x256xbf16>
    %7 = vector.broadcast %5 : vector<1x256xbf16> to vector<128x256xbf16>
    %8 = arith.addf %6, %7 : vector<128x256xbf16>
    %cst_5 = arith.constant 0.000000e+00 : bf16
    %9 = vector.broadcast %cst_5 : bf16 to vector<128x256xbf16>
    %10 = arith.maximumf %8, %9 : vector<128x256xbf16>
    %c0_6 = arith.constant 0 : index
    %c0_7 = arith.constant 0 : index
    %11 = vector.load %arg4[%c0_6, %c0_7] : memref<256x256xbf16, #tpu.memory_space<vmem>>, vector<256x256xbf16>
    %cst_8 = arith.constant dense<0.000000e+00> : vector<128x256xf32>
    %12 = tpu.matmul %10, %11, %cst_8 {dimension_numbers = #tpu.dot_dimension_numbers<[1], [0], [0], [1], [0, 0, 1, 1], [], []>} : vector<128x256xbf16>, vector<256x256xbf16>, vector<128x256xf32> -> vector<128x256xf32>
    %c0_9 = arith.constant 0 : index
    %c0_10 = arith.constant 0 : index
    %13 = vector.load %arg5[%c0_9, %c0_10] : memref<1x256xf32, #tpu.memory_space<vmem>>, vector<1x256xf32>
    %14 = arith.truncf %13 : vector<1x256xf32> to vector<1x256xbf16>
    %15 = arith.truncf %12 : vector<128x256xf32> to vector<128x256xbf16>
    %16 = vector.broadcast %14 : vector<1x256xbf16> to vector<128x256xbf16>
    %17 = arith.addf %15, %16 : vector<128x256xbf16>
    %cst_11 = arith.constant 0.000000e+00 : bf16
    %18 = vector.broadcast %cst_11 : bf16 to vector<128x256xbf16>
    %19 = arith.maximumf %17, %18 : vector<128x256xbf16>
    %c0_12 = arith.constant 0 : index
    %c0_13 = arith.constant 0 : index
    %20 = vector.load %arg6[%c0_12, %c0_13] : memref<256x256xbf16, #tpu.memory_space<vmem>>, vector<256x256xbf16>
    %cst_14 = arith.constant dense<0.000000e+00> : vector<128x256xf32>
    %21 = tpu.matmul %19, %20, %cst_14 {dimension_numbers = #tpu.dot_dimension_numbers<[1], [0], [0], [1], [0, 0, 1, 1], [], []>} : vector<128x256xbf16>, vector<256x256xbf16>, vector<128x256xf32> -> vector<128x256xf32>
    %c0_15 = arith.constant 0 : index
    %c0_16 = arith.constant 0 : index
    %22 = vector.load %arg7[%c0_15, %c0_16] : memref<1x256xf32, #tpu.memory_space<vmem>>, vector<1x256xf32>
    %23 = arith.truncf %22 : vector<1x256xf32> to vector<1x256xbf16>
    %24 = arith.truncf %21 : vector<128x256xf32> to vector<128x256xbf16>
    %25 = vector.broadcast %23 : vector<1x256xbf16> to vector<128x256xbf16>
    %26 = arith.addf %24, %25 : vector<128x256xbf16>
    %cst_17 = arith.constant 0.000000e+00 : bf16
    %27 = vector.broadcast %cst_17 : bf16 to vector<128x256xbf16>
    %28 = arith.maximumf %26, %27 : vector<128x256xbf16>
    %c0_18 = arith.constant 0 : index
    %c0_19 = arith.constant 0 : index
    %29 = vector.load %arg8[%c0_18, %c0_19] : memref<256x8xbf16, #tpu.memory_space<vmem>>, vector<256x8xbf16>
    %cst_20 = arith.constant dense<0.000000e+00> : vector<128x8xf32>
    %30 = tpu.matmul %28, %29, %cst_20 {dimension_numbers = #tpu.dot_dimension_numbers<[1], [0], [0], [1], [0, 0, 1, 1], [], []>} : vector<128x256xbf16>, vector<256x8xbf16>, vector<128x8xf32> -> vector<128x8xf32>
    %c0_21 = arith.constant 0 : index
    %c0_22 = arith.constant 0 : index
    %31 = vector.load %arg9[%c0_21, %c0_22] : memref<1x8xf32, #tpu.memory_space<vmem>>, vector<1x8xf32>
    %32 = vector.broadcast %31 : vector<1x8xf32> to vector<128x8xf32>
    %33 = arith.addf %30, %32 : vector<128x8xf32>
    %34 = vector.extract_strided_slice %33 {offsets = [0, 0], sizes = [128, 1], strides = [1, 1]} : vector<128x8xf32> to vector<128x1xf32>
    %c0_23 = arith.constant 0 : index
    %c0_24 = arith.constant 0 : index
    %35 = vector.load %arg10[%c0_23, %c0_24] : memref<128x1xf32, #tpu.memory_space<vmem>>, vector<128x1xf32>
    tpu.vector_store %arg10[%c0_23, %c0_24], %34 {strides = array<i32>} : memref<128x1xf32, #tpu.memory_space<vmem>>, vector<128x1xf32>,
    return
  }
  func.func @transform_0(%arg0: i32) -> (i32, i32) {
    %c0_i32 = arith.constant 0 : i32
    %c0_i32_0 = arith.constant 0 : i32
    return %arg0, %c0_i32 : i32, i32
  }
  func.func @transform_1(%arg0: i32) -> (i32, i32) {
    %c0_i32 = arith.constant 0 : i32
    %c0_i32_0 = arith.constant 0 : i32
    %c0_i32_1 = arith.constant 0 : i32
    return %c0_i32, %c0_i32_0 : i32, i32
  }
  func.func @transform_2(%arg0: i32) -> (i32, i32) {
    %c0_i32 = arith.constant 0 : i32
    %c0_i32_0 = arith.constant 0 : i32
    %c0_i32_1 = arith.constant 0 : i32
    return %c0_i32, %c0_i32_0 : i32, i32
  }
  func.func @transform_3(%arg0: i32) -> (i32, i32) {
    %c0_i32 = arith.constant 0 : i32
    %c0_i32_0 = arith.constant 0 : i32
    %c0_i32_1 = arith.constant 0 : i32
    return %c0_i32, %c0_i32_0 : i32, i32
  }
  func.func @transform_4(%arg0: i32) -> (i32, i32) {
    %c0_i32 = arith.constant 0 : i32
    %c0_i32_0 = arith.constant 0 : i32
    %c0_i32_1 = arith.constant 0 : i32
    return %c0_i32, %c0_i32_0 : i32, i32
  }
  func.func @transform_5(%arg0: i32) -> (i32, i32) {
    %c0_i32 = arith.constant 0 : i32
    %c0_i32_0 = arith.constant 0 : i32
    %c0_i32_1 = arith.constant 0 : i32
    return %c0_i32, %c0_i32_0 : i32, i32
  }
  func.func @transform_6(%arg0: i32) -> (i32, i32) {
    %c0_i32 = arith.constant 0 : i32
    %c0_i32_0 = arith.constant 0 : i32
    %c0_i32_1 = arith.constant 0 : i32
    return %c0_i32, %c0_i32_0 : i32, i32
  }
  func.func @transform_7(%arg0: i32) -> (i32, i32) {
    %c0_i32 = arith.constant 0 : i32
    %c0_i32_0 = arith.constant 0 : i32
    %c0_i32_1 = arith.constant 0 : i32
    return %c0_i32, %c0_i32_0 : i32, i32
  }
  func.func @transform_8(%arg0: i32) -> (i32, i32) {
    %c0_i32 = arith.constant 0 : i32
    %c0_i32_0 = arith.constant 0 : i32
    %c0_i32_1 = arith.constant 0 : i32
    return %c0_i32, %c0_i32_0 : i32, i32
  }
  func.func @transform_9(%arg0: i32) -> (i32, i32) {
    %c0_i32 = arith.constant 0 : i32
    %c0_i32_0 = arith.constant 0 : i32
    return %arg0, %c0_i32 : i32, i32
  }
}

</mosaic_0001>

<bundles_post_ra>
// kernel: reward_mlp_forward.1
= control target key start
LH: loop header
LB: loop body
LE: loop exit
PB: predicated region body
PF: predicated region fallthrough
CT: control target
= control target key end

     0   :  { %14 = vsyncpa [#allocation3], 0  ;;  %s1644_s30 = smov [#allocation2]   ;;  %s2156_s0 = inlined_call_operand.vmem [shape: f32[128,32], index: 0, kind: input, shape index: {}]   ;;  %s2157_s1 = inlined_call_operand.vmem [shape: bf16[32,256], index: 1, kind: input, shape index: {}]   ;;  %s2158_s2 = inlined_call_operand.vmem [shape: f32[1,256], index: 2, kind: input, shape index: {}]   ;;  %s2159_s3 = inlined_call_operand.vmem [shape: bf16[256,256], index: 3, kind: input, shape index: {}]   ;;  %s2160_s4 = inlined_call_operand.vmem [shape: f32[1,256], index: 4, kind: input, shape index: {}]   ;;  %s2161_s5 = inlined_call_operand.hbm [shape: bf16[256,256], index: 5, kind: input, shape index: {}]   ;;  %s2162_s6 = inlined_call_operand.vmem [shape: f32[1,256], index: 6, kind: input, shape index: {}]   ;;  %s2163_s7 = inlined_call_operand.vmem [shape: bf16[256,8], index: 7, kind: input, shape index: {}]   ;;  %s2164_s8 = inlined_call_operand.vmem [shape: f32[1,8], index: 8, kind: input, shape index: {}]   ;;  %s2165_s9 = inlined_call_operand.vmem [shape: f32[128,1], index: 9, kind: output, shape index: {}]  }
   0x1   :  { %s30_s10 = sshll.u32 %s1644_s30, 4  ;;  %s1620_s13 = scalar_lea.hbm %s2161_s5, 4096  ;;  %s31_s10 = int_to_ptr.vmem [resolvable:$true] %s30_s10 }
   0x2   :  { %p1621_p0 = scmp.ne.s32.totalorder %s2161_s5, %s1620_s13  ;;  %p1624_p1 = scmp.lt.u32.totalorder %s1620_s13, %s2161_s5 }
   0x4   :  { %p1626_p2 = pnand %p1624_p1, %p1621_p0 }
   0x6   :  { %1629 = shalt.err (!%p1626_p2)
}
   0x7   :  { %s1630_s18 = scalar_lea.vmem %s31_s10, 4096  ;;  %p1635_p4 = scmp.lt.s32.totalorder %s31_s10, %s31_s10 }
   0x8   :  { %p1631_p3 = scmp.ne.s32.totalorder %s31_s10, %s1630_s18  ;;  %p1636_p5 = scmp.lt.s32.totalorder %s1630_s18, %s1630_s18 }
   0xa   :  { %p1637_p6 = por %p1636_p5, %p1635_p4 }
   0xc   :  { %p1638_p7 = pnand %p1637_p6, %p1631_p3 }
   0xe   :  { %1641 = shalt.err (!%p1638_p7)
}
   0xf   :  { %s1645_s19 = smov 128   ;;  %s1646_s20 = smov 8  }
  0x10   :  { %36 = dma.hbm_to_vmem [thread:$0]  %s2161_s5, 4096, %s31_s10, [#allocation3], %s1645_s19, %s1645_s19, %s1646_s20  }
  0x11   :  { %1642 = dma.done.wait [#allocation3], 4096  }
  0x12   :  { %1643 = vsyncadd [#allocation3], 4294963200  ;;  %v1647_v0 = vmov 0   ;;  %v1502_v1 = vld [vmem:[%s2157_s1 + $0x4] ss:$8 sps:$4 sm:$0xff]   ;;  %vm95_vm0 = vcmask 261120  }
  0x13   :  { %152 = vmatprep.mubr.bf16.mxu0 %v1647_v0  ;;  %v1504_v2 = vld [vmem:[%s2157_s1] ss:$8 sps:$4 sm:$0xff]   ;;  %120 = vmatprep.subr.bf16.mxu0 %v1502_v1  ;;  %v1505_v3 = vld [vmem:[%s2157_s1 + $0x14] ss:$8 sps:$4 sm:$0xff]   ;;  %v1507_v4 = vld [vmem:[%s2157_s1 + $0x10] ss:$8 sps:$4 sm:$0xff]  }
  0x14   :  { %121 = vmatpush1.bf16.msra.mxu0 %v1504_v2  ;;  %v47_v5 = vld [vmem:[%s2156_s0] sm:$0xff]  ;;  %v48_v6 = vld [vmem:[%s2156_s0 + $0x8] sm:$0xff]  ;;  %v49_v10 = vld [vmem:[%s2156_s0 + $0x10] sm:$0xff]  ;;  %vm1303_vm1 = vcmask 7168  }
  0x15   :  { %122 = vmatprep.subr.bf16.mxu0 %v1505_v3  ;;  %v63_v7 = vpack.c.bf16 %v48_v6, %v47_v5  ;;  %v1508_v8 = vld [vmem:[%s2159_s3 + $0x4] ss:$8 sps:$4 sm:$0xff]   ;;  %v1510_v9 = vld [vmem:[%s2159_s3] ss:$8 sps:$4 sm:$0xff]   ;;  %v1511_v11 = vld [vmem:[%s2159_s3 + $0x14] ss:$8 sps:$4 sm:$0xff]  }
  0x16   :  { %501 = vmatprep.subr.bf16.mxu1 %v1508_v8  ;;  %v50_v12 = vld [vmem:[%s2156_s0 + $0x18] sm:$0xff]  ;;  %v1514_v14 = vld [vmem:[%s2159_s3 + $0x24] ss:$8 sps:$4 sm:$0xff]   ;;  %v1516_v16 = vld [vmem:[%s2159_s3 + $0x20] ss:$8 sps:$4 sm:$0xff]  }
  0x17   :  { %502 = vmatpush1.bf16.msra.mxu1 %v1510_v9  ;;  %v1513_v13 = vld [vmem:[%s2159_s3 + $0x10] ss:$8 sps:$4 sm:$0xff]   ;;  %v64_v15 = vpack.c.bf16 %v50_v12, %v49_v10  ;;  %v1517_v17 = vld [vmem:[%s2159_s3 + $0x34] ss:$8 sps:$4 sm:$0xff]   ;;  %v51_v18 = vld [vmem:[%s2156_s0 + $0x20] sm:$0xff] }
  0x18   :  { %123 = vmatpush1.bf16.msra.mxu0 %v1507_v4  ;;  %503 = vmatprep.subr.bf16.mxu1 %v1511_v11  ;;  %v52_v19 = vld [vmem:[%s2156_s0 + $0x28] sm:$0xff]  ;;  %v1519_v20 = vld [vmem:[%s2159_s3 + $0x30] ss:$8 sps:$4 sm:$0xff]   ;;  %v1523_v24 = vld [vmem:[%s2159_s3 + $0x54] ss:$8 sps:$4 sm:$0xff]  }
  0x19   :  { %v1520_v21 = vld [vmem:[%s2159_s3 + $0x44] ss:$8 sps:$4 sm:$0xff]   ;;  %v65_v22 = vpack.c.bf16 %v52_v19, %v51_v18  ;;  %v1522_v23 = vld [vmem:[%s2159_s3 + $0x40] ss:$8 sps:$4 sm:$0xff]   ;;  %v53_v25 = vld [vmem:[%s2156_s0 + $0x30] sm:$0xff]  ;;  %v235_v19 = vlaneseq }
  0x1a   :  { %v54_v26 = vld [vmem:[%s2156_s0 + $0x38] sm:$0xff]  ;;  %v1526_v28 = vld [vmem:[%s2159_s3 + $0x64] ss:$8 sps:$4 sm:$0xff]   ;;  %v1528_v29 = vld [vmem:[%s2159_s3 + $0x60] ss:$8 sps:$4 sm:$0xff]  }
  0x1b   :  { %1329 = vmatmul.mubr.msk.bf16.vlgmr.msra.gmra.mrb[0].mxu0 %vm95_vm0, %v63_v7  ;;  %504 = vmatpush1.bf16.msra.mxu1 %v1513_v13  ;;  %v1525_v27 = vld [vmem:[%s2159_s3 + $0x50] ss:$8 sps:$4 sm:$0xff]   ;;  %v66_v30 = vpack.c.bf16 %v54_v26, %v53_v25  ;;  %v1529_v31 = vld [vmem:[%s2159_s3 + $0x74] ss:$8 sps:$4 sm:$0xff]   ;;  %v55_v32 = vld [vmem:[%s2156_s0 + $0x40] sm:$0xff] }
  0x1c   :  { %162 = vmatprep.mubr.bf16.mxu0 %v1647_v0  ;;  %505 = vmatprep.subr.bf16.mxu1 %v1514_v14  ;;  %v56_v33 = vld [vmem:[%s2156_s0 + $0x48] sm:$0xff]  ;;  %v1531_v34 = vld [vmem:[%s2159_s3 + $0x70] ss:$8 sps:$4 sm:$0xff]   ;;  %v1535_v38 = vld [vmem:[%s2159_s3 + $0x94] ss:$8 sps:$4 sm:$0xff]  }
  0x1d   :  { %v1532_v35 = vld [vmem:[%s2159_s3 + $0x84] ss:$8 sps:$4 sm:$0xff]   ;;  %v1534_v36 = vld [vmem:[%s2159_s3 + $0x80] ss:$8 sps:$4 sm:$0xff]   ;;  %v67_v37 = vpack.c.bf16 %v56_v33, %v55_v32  ;;  %v57_v39 = vld [vmem:[%s2156_s0 + $0x50] sm:$0xff] }
  0x1e   :  { %v58_v40 = vld [vmem:[%s2156_s0 + $0x58] sm:$0xff]  ;;  %v1538_v42 = vld [vmem:[%s2159_s3 + $0xa4] ss:$8 sps:$4 sm:$0xff]   ;;  %v1540_v43 = vld [vmem:[%s2159_s3 + $0xa0] ss:$8 sps:$4 sm:$0xff]  }
  0x1f   :  { %506 = vmatpush1.bf16.msra.mxu1 %v1516_v16  ;;  %v1537_v41 = vld [vmem:[%s2159_s3 + $0x90] ss:$8 sps:$4 sm:$0xff]   ;;  %v68_v44 = vpack.c.bf16 %v58_v40, %v57_v39  ;;  %v1541_v45 = vld [vmem:[%s2159_s3 + $0xb4] ss:$8 sps:$4 sm:$0xff]   ;;  %v59_v46 = vld [vmem:[%s2156_s0 + $0x60] sm:$0xff] }
  0x20   :  { %507 = vmatprep.subr.bf16.mxu1 %v1517_v17  ;;  %v60_v47 = vld [vmem:[%s2156_s0 + $0x68] sm:$0xff]  ;;  %v1543_v48 = vld [vmem:[%s2159_s3 + $0xb0] ss:$8 sps:$4 sm:$0xff]   ;;  %v1547_v52 = vld [vmem:[%s2159_s3 + $0xd4] ss:$8 sps:$4 sm:$0xff]  }
  0x21   :  { %v1544_v49 = vld [vmem:[%s2159_s3 + $0xc4] ss:$8 sps:$4 sm:$0xff]   ;;  %v69_v50 = vpack.c.bf16 %v60_v47, %v59_v46  ;;  %v1546_v51 = vld [vmem:[%s2159_s3 + $0xc0] ss:$8 sps:$4 sm:$0xff]   ;;  %v61_v53 = vld [vmem:[%s2156_s0 + $0x70] sm:$0xff] }
  0x22   :  { %v62_v54 = vld [vmem:[%s2156_s0 + $0x78] sm:$0xff]  ;;  %v1550_v57 = vld [vmem:[%s2159_s3 + $0xe4] ss:$8 sps:$4 sm:$0xff]   ;;  %v1552_v58 = vld [vmem:[%s2159_s3 + $0xe0] ss:$8 sps:$4 sm:$0xff]  }
  0x23   :  { %1330 = vmatmul.mubr.msk.bf16.gmra.mrb[4].mxu0 %vm95_vm0, %v64_v15  ;;  %508 = vmatpush1.bf16.msra.mxu1 %v1519_v20  ;;  %v70_v55 = vpack.c.bf16 %v62_v54, %v61_v53  ;;  %v1549_v56 = vld [vmem:[%s2159_s3 + $0xd0] ss:$8 sps:$4 sm:$0xff]   ;;  %v1553_v59 = vld [vmem:[%s2159_s3 + $0xf4] ss:$8 sps:$4 sm:$0xff]   ;;  %v1556_v61 = vld [vmem:[#allocation2] ss:$8 sps:$4 sm:$0xff]  }
  0x24   :  { %172 = vmatprep.mubr.bf16.mxu0 %v1647_v0  ;;  %509 = vmatprep.subr.bf16.mxu1 %v1520_v21  ;;  %v1555_v60 = vld [vmem:[%s2159_s3 + $0xf0] ss:$8 sps:$4 sm:$0xff]   ;;  %v1558_v62 = vld [vmem:[#allocation2 + $0x4] ss:$8 sps:$4 sm:$0xff]   ;;  %v1561_v63 = vld [vmem:[#allocation2 + $0x14] ss:$8 sps:$4 sm:$0xff]  }
  0x25   :  { %882 = vmatprep.subr.bf16.mxu0 %v1558_v62  ;;  %v1559_v1 = vld [vmem:[#allocation2 + $0x10] ss:$8 sps:$4 sm:$0xff]   ;;  %v1564_v2 = vld [vmem:[#allocation2 + $0x24] ss:$8 sps:$4 sm:$0xff]   ;;  %v1562_v3 = vld [vmem:[#allocation2 + $0x20] ss:$8 sps:$4 sm:$0xff]  }
  0x26   :  { %883 = vmatpush1.bf16.msra.mxu0 %v1556_v61  ;;  %v1567_v4 = vld [vmem:[#allocation2 + $0x34] ss:$8 sps:$4 sm:$0xff]   ;;  %v1565_v5 = vld [vmem:[#allocation2 + $0x30] ss:$8 sps:$4 sm:$0xff]   ;;  %v1570_v6 = vld [vmem:[#allocation2 + $0x44] ss:$8 sps:$4 sm:$0xff]  }
  0x27   :  { %510 = vmatpush1.bf16.msra.mxu1 %v1522_v23  ;;  %884 = vmatprep.subr.bf16.mxu0 %v1561_v63  ;;  %v1568_v7 = vld [vmem:[#allocation2 + $0x40] ss:$8 sps:$4 sm:$0xff]   ;;  %v1573_v8 = vld [vmem:[#allocation2 + $0x54] ss:$8 sps:$4 sm:$0xff]   ;;  %v1571_v9 = vld [vmem:[#allocation2 + $0x50] ss:$8 sps:$4 sm:$0xff]  }
  0x28   :  { %511 = vmatprep.subr.bf16.mxu1 %v1523_v24  ;;  %v1576_v10 = vld [vmem:[#allocation2 + $0x64] ss:$8 sps:$4 sm:$0xff]   ;;  %v1574_v11 = vld [vmem:[#allocation2 + $0x60] ss:$8 sps:$4 sm:$0xff]   ;;  %v1579_v12 = vld [vmem:[#allocation2 + $0x74] ss:$8 sps:$4 sm:$0xff]  }
  0x29   :  { %v1577_v13 = vld [vmem:[#allocation2 + $0x70] ss:$8 sps:$4 sm:$0xff]   ;;  %v1582_v14 = vld [vmem:[#allocation2 + $0x84] ss:$8 sps:$4 sm:$0xff]   ;;  %v1580_v15 = vld [vmem:[#allocation2 + $0x80] ss:$8 sps:$4 sm:$0xff]  }
  0x2a   :  { %885 = vmatpush1.bf16.msra.mxu0 %v1559_v1  ;;  %v1585_v16 = vld [vmem:[#allocation2 + $0x94] ss:$8 sps:$4 sm:$0xff]   ;;  %v1583_v17 = vld [vmem:[#allocation2 + $0x90] ss:$8 sps:$4 sm:$0xff]   ;;  %v1588_v18 = vld [vmem:[#allocation2 + $0xa4] ss:$8 sps:$4 sm:$0xff]  }
  0x2b   :  { %1331 = vmatmul.mubr.msk.bf16.gmra.mrb[8].mxu0 %vm95_vm0, %v65_v22  ;;  %512 = vmatpush1.bf16.msra.mxu1 %v1525_v27  ;;  %v1586_v20 = vld [vmem:[#allocation2 + $0xa0] ss:$8 sps:$4 sm:$0xff]   ;;  %v1591_v21 = vld [vmem:[#allocation2 + $0xb4] ss:$8 sps:$4 sm:$0xff]   ;;  %v236_v22 = vshrl.u32 %v235_v19, 7 }
  0x2c   :  { %182 = vmatprep.mubr.bf16.mxu0 %v1647_v0  ;;  %513 = vmatprep.subr.bf16.mxu1 %v1526_v28  ;;  %v1589_v23 = vld [vmem:[#allocation2 + $0xb0] ss:$8 sps:$4 sm:$0xff]   ;;  %v1594_v24 = vld [vmem:[#allocation2 + $0xc4] ss:$8 sps:$4 sm:$0xff]   ;;  %v233_v26 = vld [vmem:[%s2158_s2] sm:$0x3] }
  0x2d   :  { %886 = vmatprep.subr.bf16.mxu0 %v1564_v2  ;;  %v1882_v25 = vsub.s32 0, %v236_v22  ;;  %v1887_v27 = vsub.s32 1, %v236_v22  ;;  %v1592_v28 = vld [vmem:[#allocation2 + $0xc0] ss:$8 sps:$4 sm:$0xff]   ;;  %v1595_v32 = vld [vmem:[#allocation2 + $0xd0] ss:$8 sps:$4 sm:$0xff]  }
  0x2e   :  { %887 = vmatpush1.bf16.msra.mxu0 %v1562_v3 }
  0x2f   :  { %514 = vmatpush1.bf16.msra.mxu1 %v1528_v29  ;;  %888 = vmatprep.subr.bf16.mxu0 %v1567_v4  ;;  %v1597_v29 = vld [vmem:[#allocation2 + $0xd4] ss:$8 sps:$4 sm:$0xff]  }
  0x30   :  { %515 = vmatprep.subr.bf16.mxu1 %v1529_v31  ;;  %v242_v31 = vrot.slane %v233_v26, %v1887_v27 }
  0x32   :  { %889 = vmatpush1.bf16.msra.mxu0 %v1565_v5 }
  0x33   :  { %1332 = vmatmul.mubr.msk.bf16.gmra.mrb[12].mxu0 %vm95_vm0, %v66_v30  ;;  %516 = vmatpush1.bf16.msra.mxu1 %v1531_v34  ;;  %v238_v30 = vrot.slane %v233_v26, %v1882_v25  ;;  %v246_v34 = vpack.c.bf16 %v242_v31, %v242_v31 }
  0x34   :  { %192 = vmatprep.mubr.bf16.mxu0 %v1647_v0  ;;  %517 = vmatprep.subr.bf16.mxu1 %v1532_v35 }
  0x35   :  { %890 = vmatprep.subr.bf16.mxu0 %v1570_v6  ;;  %v245_v33 = vpack.c.bf16 %v238_v30, %v238_v30 }
  0x36   :  { %891 = vmatpush1.bf16.msra.mxu0 %v1568_v7 }
  0x37   :  { %518 = vmatpush1.bf16.msra.mxu1 %v1534_v36  ;;  %892 = vmatprep.subr.bf16.mxu0 %v1573_v8  ;;  %v264_v35 = vpack.i.b16 %v245_v33, %v245_v33  ;;  %v271_v36 = vpack.i.b16 %v246_v34, %v246_v34 }
  0x38   :  { %519 = vmatprep.subr.bf16.mxu1 %v1535_v38 }
  0x39   :  { %v1892_v39 = vrot.slane %v264_v35, %v1882_v25 }
  0x3a   :  { %893 = vmatpush1.bf16.msra.mxu0 %v1571_v9 }
  0x3b   :  { %1333 = vmatmul.mubr.msk.bf16.gmra.mrb[16].mxu0 %vm95_vm0, %v67_v37  ;;  %520 = vmatpush1.bf16.msra.mxu1 %v1537_v41  ;;  %v1895_v41 = vrot.slane %v271_v36, %v1882_v25 }
  0x3c   :  { %202 = vmatprep.mubr.bf16.mxu0 %v1647_v0  ;;  %521 = vmatprep.subr.bf16.mxu1 %v1538_v42 }
  0x3d   :  { %894 = vmatprep.subr.bf16.mxu0 %v1576_v10 }
  0x3e   :  { %895 = vmatpush1.bf16.msra.mxu0 %v1574_v11 }
  0x3f   :  { %522 = vmatpush1.bf16.msra.mxu1 %v1540_v43  ;;  %896 = vmatprep.subr.bf16.mxu0 %v1579_v12 }
  0x40   :  { %523 = vmatprep.subr.bf16.mxu1 %v1541_v45 }
  0x42   :  { %897 = vmatpush1.bf16.msra.mxu0 %v1577_v13 }
  0x43   :  { %1334 = vmatmul.mubr.msk.bf16.gmra.mrb[20].mxu0 %vm95_vm0, %v68_v44  ;;  %524 = vmatpush1.bf16.msra.mxu1 %v1543_v48 }
  0x44   :  { %212 = vmatprep.mubr.bf16.mxu0 %v1647_v0  ;;  %525 = vmatprep.subr.bf16.mxu1 %v1544_v49 }
  0x45   :  { %898 = vmatprep.subr.bf16.mxu0 %v1582_v14 }
  0x46   :  { %899 = vmatpush1.bf16.msra.mxu0 %v1580_v15 }
  0x47   :  { %526 = vmatpush1.bf16.msra.mxu1 %v1546_v51  ;;  %900 = vmatprep.subr.bf16.mxu0 %v1585_v16 }
  0x48   :  { %527 = vmatprep.subr.bf16.mxu1 %v1547_v52 }
  0x4a   :  { %901 = vmatpush1.bf16.msra.mxu0 %v1583_v17 }
  0x4b   :  { %1335 = vmatmul.mubr.msk.bf16.gmra.mrb[24].mxu0 %vm95_vm0, %v69_v50  ;;  %528 = vmatpush1.bf16.msra.mxu1 %v1549_v56 }
  0x4c   :  { %222 = vmatprep.mubr.bf16.mxu0 %v1647_v0  ;;  %529 = vmatprep.subr.bf16.mxu1 %v1550_v57 }
  0x4d   :  { %902 = vmatprep.subr.bf16.mxu0 %v1588_v18 }
  0x4e   :  { %903 = vmatpush1.bf16.msra.mxu0 %v1586_v20 }
  0x4f   :  { %530 = vmatpush1.bf16.msra.mxu1 %v1552_v58  ;;  %904 = vmatprep.subr.bf16.mxu0 %v1591_v21 }
  0x50   :  { %531 = vmatprep.subr.bf16.mxu1 %v1553_v59 }
  0x52   :  { %905 = vmatpush1.bf16.msra.mxu0 %v1589_v23 }
  0x53   :  { %1336 = vmatmul.mubr.msk.bf16.gmra.mrb[28].mxu0 %vm95_vm0, %v70_v55  ;;  %532 = vmatpush1.bf16.msra.mxu1 %v1555_v60 }
  0x54   :  { %906 = vmatprep.subr.bf16.mxu0 %v1594_v24 }
  0x56   :  { %907 = vmatpush1.bf16.msra.mxu0 %v1592_v28 }
  0x57   :  { %908 = vmatprep.subr.bf16.mxu0 %v1597_v29 }
  0x5a   :  { %909 = vmatpush1.bf16.msra.mxu0 %v1595_v32 }
  0xee   :  { %v154_v37 = vpop.f32.mrb[0].mxu0 }
  0xef   :  { %v156_v38 = vpop.f32.mrb[1].mxu0 }
  0xf0   :  { %v158_v40 = vpop.f32.mrb[2].mxu0 }
  0xf1   :  { %v247_v42 = vpack.c.bf16 %v158_v40, %v154_v37  ;;  %v160_v43 = vpop.f32.mrb[3].mxu0 }
  0xf2   :  { %v248_v44 = vpack.c.bf16 %v160_v43, %v156_v38 }
  0xf3   :  { %v277_v45 = vadd.bf16 %v1892_v39, %v247_v42 }
  0xf4   :  { %v278_v46 = vadd.bf16 %v1895_v41, %v248_v44 }
  0xf5   :  { %v293_v50 = vmax.bf16 %v1647_v0, %v277_v45 }
  0xf6   :  { %v164_v47 = vpop.f32.mrb[4].mxu0  ;;  %v294_v48 = vmax.bf16 %v1647_v0, %v278_v46 }
  0xf7   :  { %v166_v49 = vpop.f32.mrb[5].mxu0 }
  0xf8   :  { %v168_v51 = vpop.f32.mrb[6].mxu0  ;;  %533 = vmatprep.mubr.bf16.mxu1 %v294_v48 }
  0xf9   :  { %v249_v52 = vpack.c.bf16 %v168_v51, %v164_v47  ;;  %v170_v53 = vpop.f32.mrb[7].mxu0  ;;  %534 = vmatmul.mubr.bf16.vlgmr.msra.gmra.mrb[0].mxu1 %v293_v50 }
  0xfa   :  { %v250_v54 = vpack.c.bf16 %v170_v53, %v166_v49 }
  0xfb   :  { %v279_v55 = vadd.bf16 %v1892_v39, %v249_v52 }
  0xfc   :  { %v280_v56 = vadd.bf16 %v1895_v41, %v250_v54 }
  0xfd   :  { %v295_v60 = vmax.bf16 %v1647_v0, %v279_v55 }
  0xfe   :  { %v174_v57 = vpop.f32.mrb[8].mxu0  ;;  %v296_v58 = vmax.bf16 %v1647_v0, %v280_v56 }
  0xff   :  { %v176_v59 = vpop.f32.mrb[9].mxu0 }
 0x100   :  { %v178_v61 = vpop.f32.mrb[10].mxu0  ;;  %543 = vmatprep.mubr.bf16.mxu1 %v296_v58 }
 0x101   :  { %v251_v62 = vpack.c.bf16 %v178_v61, %v174_v57  ;;  %v180_v63 = vpop.f32.mrb[11].mxu0  ;;  %544 = vmatmul.mubr.bf16.gmra.mrb[4].mxu1 %v295_v60  ;;  %v1600_v60 = vld [vmem:[#allocation2 + $0xe4] ss:$8 sps:$4 sm:$0xff]   ;;  %v1598_v61 = vld [vmem:[#allocation2 + $0xe0] ss:$8 sps:$4 sm:$0xff]  }
 0x102   :  { %v252_v1 = vpack.c.bf16 %v180_v63, %v176_v59  ;;  %910 = vmatprep.subr.bf16.mxu0 %v1600_v60  ;;  %v1601_v63 = vld [vmem:[#allocation2 + $0xf0] ss:$8 sps:$4 sm:$0xff]  }
 0x103   :  { %v281_v2 = vadd.bf16 %v1892_v39, %v251_v62  ;;  %911 = vmatpush1.bf16.msra.mxu0 %v1598_v61  ;;  %v1603_v62 = vld [vmem:[#allocation2 + $0xf4] ss:$8 sps:$4 sm:$0xff]  }
 0x104   :  { %v282_v3 = vadd.bf16 %v1895_v41, %v252_v1  ;;  %912 = vmatprep.subr.bf16.mxu0 %v1603_v62  ;;  %v1606_v1 = vld [vmem:[%s2163_s7 + $0x48] sm:$0xff]  }
 0x105   :  { %v297_v7 = vmax.bf16 %v1647_v0, %v281_v2  ;;  %v1607_v2 = vld [vmem:[%s2163_s7 + $0x8] sm:$0xff]  }
 0x106   :  { %v184_v4 = vpop.f32.mrb[12].mxu0  ;;  %v298_v5 = vmax.bf16 %v1647_v0, %v282_v3  ;;  %v1608_v3 = vld [vmem:[%s2163_s7 + $0x50] sm:$0xff]  }
 0x107   :  { %v186_v6 = vpop.f32.mrb[13].mxu0  ;;  %913 = vmatpush1.bf16.msra.mxu0 %v1601_v63 }
 0x108   :  { %v188_v8 = vpop.f32.mrb[14].mxu0  ;;  %553 = vmatprep.mubr.bf16.mxu1 %v298_v5  ;;  %v1610_v5 = vld [vmem:[%s2163_s7 + $0x58] sm:$0xff]  }
 0x109   :  { %v253_v9 = vpack.c.bf16 %v188_v8, %v184_v4  ;;  %v190_v10 = vpop.f32.mrb[15].mxu0  ;;  %554 = vmatmul.mubr.bf16.gmra.mrb[8].mxu1 %v297_v7  ;;  %v1609_v4 = vld [vmem:[%s2163_s7 + $0x10] sm:$0xff]   ;;  %v1612_v7 = vld [vmem:[%s2163_s7 + $0x60] sm:$0xff]  }
 0x10a   :  { %v254_v11 = vpack.c.bf16 %v190_v10, %v186_v6  ;;  %v1611_v6 = vld [vmem:[%s2163_s7 + $0x18] sm:$0xff]   ;;  %v1959_v8 = vld [vmem:[%s2163_s7 + $0x20] sm:$0xff]  }
 0x10b   :  { %v283_v12 = vadd.bf16 %v1892_v39, %v253_v9  ;;  %v1964_v9 = vld [vmem:[%s2163_s7 + $0x68] sm:$0xff]   ;;  %v614_v10 = vld [vmem:[%s2160_s4] sm:$0x3] }
 0x10c   :  { %v284_v13 = vadd.bf16 %v1895_v41, %v254_v11  ;;  %v619_v11 = vrot.slane %v614_v10, %v1882_v25 }
 0x10d   :  { %v299_v17 = vmax.bf16 %v1647_v0, %v283_v12  ;;  %v623_v12 = vrot.slane %v614_v10, %v1887_v27 }
 0x10e   :  { %v194_v14 = vpop.f32.mrb[16].mxu0  ;;  %v300_v15 = vmax.bf16 %v1647_v0, %v284_v13  ;;  %v626_v13 = vpack.c.bf16 %v619_v11, %v619_v11 }
 0x10f   :  { %v196_v16 = vpop.f32.mrb[17].mxu0 }
 0x110   :  { %v198_v18 = vpop.f32.mrb[18].mxu0  ;;  %563 = vmatprep.mubr.bf16.mxu1 %v300_v15  ;;  %v645_v15 = vpack.i.b16 %v626_v13, %v626_v13 }
 0x111   :  { %v255_v19 = vpack.c.bf16 %v198_v18, %v194_v14  ;;  %v200_v20 = vpop.f32.mrb[19].mxu0  ;;  %564 = vmatmul.mubr.bf16.gmra.mrb[12].mxu1 %v299_v17  ;;  %v627_v14 = vpack.c.bf16 %v623_v12, %v623_v12 }
 0x112   :  { %v256_v21 = vpack.c.bf16 %v200_v20, %v196_v16 }
 0x113   :  { %v285_v22 = vadd.bf16 %v1892_v39, %v255_v19  ;;  %v652_v16 = vpack.i.b16 %v627_v14, %v627_v14  ;;  %v1974_v19 = vrot.slane %v645_v15, %v1882_v25 }
 0x114   :  { %v286_v23 = vadd.bf16 %v1895_v41, %v256_v21 }
 0x115   :  { %v301_v29 = vmax.bf16 %v1647_v0, %v285_v22  ;;  %v1977_v21 = vrot.slane %v652_v16, %v1882_v25 }
 0x116   :  { %v204_v24 = vpop.f32.mrb[20].mxu0  ;;  %v302_v26 = vmax.bf16 %v1647_v0, %v286_v23 }
 0x117   :  { %v206_v28 = vpop.f32.mrb[21].mxu0 }
 0x118   :  { %v208_v30 = vpop.f32.mrb[22].mxu0  ;;  %573 = vmatprep.mubr.bf16.mxu1 %v302_v26 }
 0x119   :  { %v257_v31 = vpack.c.bf16 %v208_v30, %v204_v24  ;;  %v210_v32 = vpop.f32.mrb[23].mxu0  ;;  %574 = vmatmul.mubr.bf16.gmra.mrb[16].mxu1 %v301_v29 }
 0x11a   :  { %v258_v33 = vpack.c.bf16 %v210_v32, %v206_v28 }
 0x11b   :  { %v287_v34 = vadd.bf16 %v1892_v39, %v257_v31 }
 0x11c   :  { %v288_v35 = vadd.bf16 %v1895_v41, %v258_v33 }
 0x11d   :  { %v303_v40 = vmax.bf16 %v1647_v0, %v287_v34 }
 0x11e   :  { %v214_v36 = vpop.f32.mrb[24].mxu0  ;;  %v304_v37 = vmax.bf16 %v1647_v0, %v288_v35 }
 0x11f   :  { %v216_v38 = vpop.f32.mrb[25].mxu0 }
 0x120   :  { %v218_v42 = vpop.f32.mrb[26].mxu0  ;;  %583 = vmatprep.mubr.bf16.mxu1 %v304_v37 }
 0x121   :  { %v259_v43 = vpack.c.bf16 %v218_v42, %v214_v36  ;;  %v220_v44 = vpop.f32.mrb[27].mxu0  ;;  %584 = vmatmul.mubr.bf16.gmra.mrb[20].mxu1 %v303_v40 }
 0x122   :  { %v260_v45 = vpack.c.bf16 %v220_v44, %v216_v38 }
 0x123   :  { %v289_v46 = vadd.bf16 %v1892_v39, %v259_v43 }
 0x124   :  { %v290_v47 = vadd.bf16 %v1895_v41, %v260_v45 }
 0x125   :  { %v305_v51 = vmax.bf16 %v1647_v0, %v289_v46 }
 0x126   :  { %v224_v48 = vpop.f32.mrb[28].mxu0  ;;  %v306_v49 = vmax.bf16 %v1647_v0, %v290_v47 }
 0x127   :  { %v226_v50 = vpop.f32.mrb[29].mxu0 }
 0x128   :  { %v228_v52 = vpop.f32.mrb[30].mxu0  ;;  %593 = vmatprep.mubr.bf16.mxu1 %v306_v49 }
 0x129   :  { %v261_v53 = vpack.c.bf16 %v228_v52, %v224_v48  ;;  %v230_v54 = vpop.f32.mrb[31].mxu0  ;;  %594 = vmatmul.mubr.bf16.gmra.mrb[24].mxu1 %v305_v51 }
 0x12a   :  { %v262_v55 = vpack.c.bf16 %v230_v54, %v226_v50 }
 0x12b   :  { %v291_v56 = vadd.bf16 %v1892_v39, %v261_v53  ;;  %v1604_v39 = vld [vmem:[%s2163_s7 + $0x40] sm:$0xff]  }
 0x12c   :  { %v292_v57 = vadd.bf16 %v1895_v41, %v262_v55  ;;  %v1605_v41 = vld [vmem:[%s2163_s7] sm:$0xff]   ;;  %1482 = vmatprep.subr.bf16.mxu1 %v1604_v39  ;;  %1418 = vmatprep.subr.bf16.mxu0 %v1604_v39 }
 0x12d   :  { %v307_v59 = vmax.bf16 %v1647_v0, %v291_v56  ;;  %1490 = vmatpush3.bf16.msra.mxu1 %v1605_v41 }
 0x12e   :  { %v308_v58 = vmax.bf16 %v1647_v0, %v292_v57  ;;  %1483 = vmatprep.subr.bf16.mxu1 %v1606_v1 }
 0x130   :  { %603 = vmatprep.mubr.bf16.mxu1 %v308_v58 }
 0x131   :  { %604 = vmatmul.mubr.bf16.gmra.mrb[28].mxu1 %v307_v59 }
 0x132   :  { %1491 = vmatpush3.bf16.msra.mxu1 %v1607_v2 }
 0x133   :  { %1484 = vmatprep.subr.bf16.mxu1 %v1608_v3 }
 0x136   :  { %1492 = vmatpush3.bf16.msra.mxu1 %v1609_v4 }
 0x137   :  { %1485 = vmatprep.subr.bf16.mxu1 %v1610_v5 }
 0x13a   :  { %1493 = vmatpush3.bf16.msra.mxu1 %v1611_v6 }
 0x13b   :  { %1486 = vmatprep.subr.bf16.mxu1 %v1612_v7 }
 0x13e   :  { %1494 = vmatpush3.bf16.msra.mxu1 %v1959_v8 }
 0x13f   :  { %1487 = vmatprep.subr.bf16.mxu1 %v1964_v9 }
 0x1cc   :  { %v535_v17 = vpop.f32.mrb[0].mxu1 }
 0x1cd   :  { %v537_v18 = vpop.f32.mrb[1].mxu1 }
 0x1ce   :  { %v539_v20 = vpop.f32.mrb[2].mxu1 }
 0x1cf   :  { %v628_v22 = vpack.c.bf16 %v539_v20, %v535_v17  ;;  %v541_v23 = vpop.f32.mrb[3].mxu1 }
 0x1d0   :  { %v629_v24 = vpack.c.bf16 %v541_v23, %v537_v18 }
 0x1d1   :  { %v658_v26 = vadd.bf16 %v1974_v19, %v628_v22 }
 0x1d2   :  { %v659_v28 = vadd.bf16 %v1977_v21, %v629_v24 }
 0x1d3   :  { %v674_v31 = vmax.bf16 %v1647_v0, %v658_v26 }
 0x1d4   :  { %v545_v29 = vpop.f32.mrb[4].mxu1  ;;  %v675_v30 = vmax.bf16 %v1647_v0, %v659_v28 }
 0x1d5   :  { %v547_v32 = vpop.f32.mrb[5].mxu1 }
 0x1d6   :  { %v549_v33 = vpop.f32.mrb[6].mxu1  ;;  %914 = vmatprep.mubr.bf16.mxu0 %v675_v30 }
 0x1d7   :  { %v630_v34 = vpack.c.bf16 %v549_v33, %v545_v29  ;;  %v551_v35 = vpop.f32.mrb[7].mxu1  ;;  %915 = vmatmul.mubr.bf16.vlgmr.msra.gmra.mrb[32].mxu0 %v674_v31 }
 0x1d8   :  { %v631_v36 = vpack.c.bf16 %v551_v35, %v547_v32  ;;  %1419 = vmatpush3.bf16.msra.mxu0 %v1605_v41 }
 0x1d9   :  { %v660_v37 = vadd.bf16 %v1974_v19, %v630_v34  ;;  %1420 = vmatprep.subr.bf16.mxu0 %v1606_v1 }
 0x1da   :  { %v661_v38 = vadd.bf16 %v1977_v21, %v631_v36 }
 0x1db   :  { %v676_v44 = vmax.bf16 %v1647_v0, %v660_v37 }
 0x1dc   :  { %v555_v40 = vpop.f32.mrb[8].mxu1  ;;  %v677_v42 = vmax.bf16 %v1647_v0, %v661_v38  ;;  %1421 = vmatpush3.bf16.msra.mxu0 %v1607_v2 }
 0x1dd   :  { %v557_v43 = vpop.f32.mrb[9].mxu1  ;;  %1422 = vmatprep.subr.bf16.mxu0 %v1608_v3 }
 0x1de   :  { %v559_v45 = vpop.f32.mrb[10].mxu1  ;;  %924 = vmatprep.mubr.bf16.mxu0 %v677_v42 }
 0x1df   :  { %v632_v46 = vpack.c.bf16 %v559_v45, %v555_v40  ;;  %v561_v47 = vpop.f32.mrb[11].mxu1  ;;  %925 = vmatmul.mubr.bf16.gmra.mrb[36].mxu0 %v676_v44  ;;  %v1615_v44 = vld [vmem:[%s2163_s7 + $0x28] sm:$0xff]   ;;  %v1616_v45 = vld [vmem:[%s2163_s7 + $0x70] sm:$0xff]  }
 0x1e0   :  { %v633_v48 = vpack.c.bf16 %v561_v47, %v557_v43  ;;  %1423 = vmatpush3.bf16.msra.mxu0 %v1609_v4  ;;  %1495 = vmatpush3.bf16.msra.mxu1 %v1615_v44  ;;  %v995_v47 = vld [vmem:[%s2162_s6] sm:$0x3] }
 0x1e1   :  { %v662_v49 = vadd.bf16 %v1974_v19, %v632_v46  ;;  %1424 = vmatprep.subr.bf16.mxu0 %v1610_v5  ;;  %1488 = vmatprep.subr.bf16.mxu1 %v1616_v45  ;;  %v1619_v46 = vld [vmem:[%s2163_s7 + $0x38] sm:$0xff]  }
 0x1e2   :  { %v663_v50 = vadd.bf16 %v1977_v21, %v633_v48  ;;  %v1000_v48 = vrot.slane %v995_v47, %v1882_v25 }
 0x1e3   :  { %v678_v54 = vmax.bf16 %v1647_v0, %v662_v49  ;;  %v1004_v49 = vrot.slane %v995_v47, %v1887_v27 }
 0x1e4   :  { %v565_v51 = vpop.f32.mrb[12].mxu1  ;;  %v679_v52 = vmax.bf16 %v1647_v0, %v663_v50  ;;  %1425 = vmatpush3.bf16.msra.mxu0 %v1611_v6  ;;  %v1007_v50 = vpack.c.bf16 %v1000_v48, %v1000_v48 }
 0x1e5   :  { %v567_v53 = vpop.f32.mrb[13].mxu1  ;;  %1426 = vmatprep.subr.bf16.mxu0 %v1612_v7 }
 0x1e6   :  { %v569_v55 = vpop.f32.mrb[14].mxu1  ;;  %934 = vmatprep.mubr.bf16.mxu0 %v679_v52  ;;  %v1026_v52 = vpack.i.b16 %v1007_v50, %v1007_v50 }
 0x1e7   :  { %v634_v56 = vpack.c.bf16 %v569_v55, %v565_v51  ;;  %v571_v57 = vpop.f32.mrb[15].mxu1  ;;  %935 = vmatmul.mubr.bf16.gmra.mrb[40].mxu0 %v678_v54  ;;  %v1008_v51 = vpack.c.bf16 %v1004_v49, %v1004_v49 }
 0x1e8   :  { %v635_v58 = vpack.c.bf16 %v571_v57, %v567_v53  ;;  %1427 = vmatpush3.bf16.msra.mxu0 %v1959_v8 }
 0x1e9   :  { %v664_v59 = vadd.bf16 %v1974_v19, %v634_v56  ;;  %1428 = vmatprep.subr.bf16.mxu0 %v1964_v9  ;;  %v1033_v53 = vpack.i.b16 %v1008_v51, %v1008_v51  ;;  %v2034_v56 = vrot.slane %v1026_v52, %v1882_v25 }
 0x1ea   :  { %v665_v60 = vadd.bf16 %v1977_v21, %v635_v58 }
 0x1eb   :  { %v680_v39 = vmax.bf16 %v1647_v0, %v664_v59  ;;  %v2037_v58 = vrot.slane %v1033_v53, %v1882_v25 }
 0x1ec   :  { %v575_v61 = vpop.f32.mrb[16].mxu1  ;;  %v681_v62 = vmax.bf16 %v1647_v0, %v665_v60  ;;  %1429 = vmatpush3.bf16.msra.mxu0 %v1615_v44 }
 0x1ed   :  { %v577_v63 = vpop.f32.mrb[17].mxu1  ;;  %1430 = vmatprep.subr.bf16.mxu0 %v1616_v45 }
 0x1ee   :  { %v579_v41 = vpop.f32.mrb[18].mxu1  ;;  %944 = vmatprep.mubr.bf16.mxu0 %v681_v62 }
 0x1ef   :  { %v636_v1 = vpack.c.bf16 %v579_v41, %v575_v61  ;;  %v581_v2 = vpop.f32.mrb[19].mxu1  ;;  %945 = vmatmul.mubr.bf16.gmra.mrb[44].mxu0 %v680_v39 }
 0x1f0   :  { %v637_v3 = vpack.c.bf16 %v581_v2, %v577_v63 }
 0x1f1   :  { %v666_v4 = vadd.bf16 %v1974_v19, %v636_v1 }
 0x1f2   :  { %v667_v5 = vadd.bf16 %v1977_v21, %v637_v3 }
 0x1f3   :  { %v682_v9 = vmax.bf16 %v1647_v0, %v666_v4 }
 0x1f4   :  { %v585_v6 = vpop.f32.mrb[20].mxu1  ;;  %v683_v7 = vmax.bf16 %v1647_v0, %v667_v5 }
 0x1f5   :  { %v587_v8 = vpop.f32.mrb[21].mxu1 }
 0x1f6   :  { %v589_v10 = vpop.f32.mrb[22].mxu1  ;;  %954 = vmatprep.mubr.bf16.mxu0 %v683_v7 }
 0x1f7   :  { %v638_v11 = vpack.c.bf16 %v589_v10, %v585_v6  ;;  %v591_v12 = vpop.f32.mrb[23].mxu1  ;;  %955 = vmatmul.mubr.bf16.gmra.mrb[48].mxu0 %v682_v9 }
 0x1f8   :  { %v639_v13 = vpack.c.bf16 %v591_v12, %v587_v8 }
 0x1f9   :  { %v668_v14 = vadd.bf16 %v1974_v19, %v638_v11 }
 0x1fa   :  { %v669_v15 = vadd.bf16 %v1977_v21, %v639_v13 }
 0x1fb   :  { %v684_v20 = vmax.bf16 %v1647_v0, %v668_v14 }
 0x1fc   :  { %v595_v16 = vpop.f32.mrb[24].mxu1  ;;  %v685_v17 = vmax.bf16 %v1647_v0, %v669_v15 }
 0x1fd   :  { %v597_v18 = vpop.f32.mrb[25].mxu1 }
 0x1fe   :  { %v599_v22 = vpop.f32.mrb[26].mxu1  ;;  %964 = vmatprep.mubr.bf16.mxu0 %v685_v17 }
 0x1ff   :  { %v640_v23 = vpack.c.bf16 %v599_v22, %v595_v16  ;;  %v601_v24 = vpop.f32.mrb[27].mxu1  ;;  %965 = vmatmul.mubr.bf16.gmra.mrb[52].mxu0 %v684_v20 }
 0x200   :  { %v641_v26 = vpack.c.bf16 %v601_v24, %v597_v18 }
 0x201   :  { %v670_v28 = vadd.bf16 %v1974_v19, %v640_v23 }
 0x202   :  { %v671_v29 = vadd.bf16 %v1977_v21, %v641_v26 }
 0x203   :  { %v686_v33 = vmax.bf16 %v1647_v0, %v670_v28 }
 0x204   :  { %v605_v30 = vpop.f32.mrb[28].mxu1  ;;  %v687_v31 = vmax.bf16 %v1647_v0, %v671_v29 }
 0x205   :  { %v607_v32 = vpop.f32.mrb[29].mxu1 }
 0x206   :  { %v609_v34 = vpop.f32.mrb[30].mxu1  ;;  %974 = vmatprep.mubr.bf16.mxu0 %v687_v31 }
 0x207   :  { %v642_v35 = vpack.c.bf16 %v609_v34, %v605_v30  ;;  %v611_v36 = vpop.f32.mrb[31].mxu1  ;;  %975 = vmatmul.mubr.bf16.gmra.mrb[56].mxu0 %v686_v33 }
 0x208   :  { %v643_v37 = vpack.c.bf16 %v611_v36, %v607_v32 }
 0x209   :  { %v672_v38 = vadd.bf16 %v1974_v19, %v642_v35  ;;  %v1617_v19 = vld [vmem:[%s2163_s7 + $0x30] sm:$0xff]  }
 0x20a   :  { %v673_v40 = vadd.bf16 %v1977_v21, %v643_v37  ;;  %1431 = vmatpush3.bf16.msra.mxu0 %v1617_v19  ;;  %1496 = vmatpush3.bf16.msra.mxu1 %v1617_v19  ;;  %v1618_v21 = vld [vmem:[%s2163_s7 + $0x78] sm:$0xff]  }
 0x20b   :  { %v688_v43 = vmax.bf16 %v1647_v0, %v672_v38  ;;  %1432 = vmatprep.subr.bf16.mxu0 %v1618_v21  ;;  %1489 = vmatprep.subr.bf16.mxu1 %v1618_v21 }
 0x20c   :  { %v689_v42 = vmax.bf16 %v1647_v0, %v673_v40 }
 0x20e   :  { %984 = vmatprep.mubr.bf16.mxu0 %v689_v42  ;;  %1433 = vmatpush3.bf16.msra.mxu0 %v1619_v46 }
 0x20f   :  { %985 = vmatmul.mubr.bf16.gmra.mrb[60].mxu0 %v688_v43  ;;  %1497 = vmatpush3.bf16.msra.mxu1 %v1619_v46 }
 0x2aa   :  { %v916_v54 = vpop.f32.mrb[32].mxu0 }
 0x2ab   :  { %v918_v55 = vpop.f32.mrb[33].mxu0 }
 0x2ac   :  { %v920_v57 = vpop.f32.mrb[34].mxu0 }
 0x2ad   :  { %v1009_v59 = vpack.c.bf16 %v920_v57, %v916_v54  ;;  %v922_v60 = vpop.f32.mrb[35].mxu0 }
 0x2ae   :  { %v1010_v61 = vpack.c.bf16 %v922_v60, %v918_v55 }
 0x2af   :  { %v1039_v62 = vadd.bf16 %v2034_v56, %v1009_v59 }
 0x2b0   :  { %v1040_v27 = vadd.bf16 %v2037_v58, %v1010_v61 }
 0x2b1   :  { %v1055_v41 = vmax.bf16 %v1647_v0, %v1039_v62 }
 0x2b2   :  { %v926_v63 = vpop.f32.mrb[36].mxu0  ;;  %v1056_v39 = vmax.bf16 %v1647_v0, %v1040_v27 }
 0x2b3   :  { %v928_v1 = vpop.f32.mrb[37].mxu0 }
 0x2b4   :  { %v930_v2 = vpop.f32.mrb[38].mxu0  ;;  %1238 = vmatprep.mubr.bf16.mxu0 %v1056_v39 }
 0x2b5   :  { %v1011_v3 = vpack.c.bf16 %v930_v2, %v926_v63  ;;  %v932_v4 = vpop.f32.mrb[39].mxu0  ;;  %1239 = vmatmul.mubr.bf16.vlgmr.msra.gmra.mrb[64].mxu0 %v1055_v41 }
 0x2b6   :  { %v1012_v25 = vpack.c.bf16 %v932_v4, %v928_v1 }
 0x2b7   :  { %v1041_v5 = vadd.bf16 %v2034_v56, %v1011_v3 }
 0x2b8   :  { %v1042_v6 = vadd.bf16 %v2037_v58, %v1012_v25 }
 0x2b9   :  { %v1057_v10 = vmax.bf16 %v1647_v0, %v1041_v5 }
 0x2ba   :  { %v936_v7 = vpop.f32.mrb[40].mxu0  ;;  %v1058_v8 = vmax.bf16 %v1647_v0, %v1042_v6 }
 0x2bb   :  { %v938_v9 = vpop.f32.mrb[41].mxu0 }
 0x2bc   :  { %v940_v11 = vpop.f32.mrb[42].mxu0  ;;  %1246 = vmatprep.mubr.bf16.mxu0 %v1058_v8 }
 0x2bd   :  { %v1013_v12 = vpack.c.bf16 %v940_v11, %v936_v7  ;;  %v942_v13 = vpop.f32.mrb[43].mxu0  ;;  %1247 = vmatmul.mubr.bf16.gmra.mrb[68].mxu0 %v1057_v10 }
 0x2be   :  { %v1014_v14 = vpack.c.bf16 %v942_v13, %v938_v9  ;;  %v2074_v9 = vld [vmem:[%s2164_s8] ss:$0 sm:$0xff] }
 0x2bf   :  { %v1043_v15 = vadd.bf16 %v2034_v56, %v1013_v12 }
 0x2c0   :  { %v1044_v16 = vadd.bf16 %v2037_v58, %v1014_v14 }
 0x2c1   :  { %v1059_v22 = vmax.bf16 %v1647_v0, %v1043_v15 }
 0x2c2   :  { %v946_v17 = vpop.f32.mrb[44].mxu0  ;;  %v1060_v18 = vmax.bf16 %v1647_v0, %v1044_v16 }
 0x2c3   :  { %v948_v20 = vpop.f32.mrb[45].mxu0 }
 0x2c4   :  { %v950_v23 = vpop.f32.mrb[46].mxu0  ;;  %1254 = vmatprep.mubr.bf16.mxu0 %v1060_v18 }
 0x2c5   :  { %v1015_v24 = vpack.c.bf16 %v950_v23, %v946_v17  ;;  %v952_v26 = vpop.f32.mrb[47].mxu0  ;;  %1255 = vmatmul.mubr.bf16.gmra.mrb[72].mxu0 %v1059_v22 }
 0x2c6   :  { %v1016_v28 = vpack.c.bf16 %v952_v26, %v948_v20 }
 0x2c7   :  { %v1045_v29 = vadd.bf16 %v2034_v56, %v1015_v24 }
 0x2c8   :  { %v1046_v30 = vadd.bf16 %v2037_v58, %v1016_v28 }
 0x2c9   :  { %v1061_v33 = vmax.bf16 %v1647_v0, %v1045_v29 }
 0x2ca   :  { %v956_v31 = vpop.f32.mrb[48].mxu0  ;;  %v1062_v32 = vmax.bf16 %v1647_v0, %v1046_v30 }
 0x2cb   :  { %v958_v34 = vpop.f32.mrb[49].mxu0 }
 0x2cc   :  { %v960_v35 = vpop.f32.mrb[50].mxu0  ;;  %1262 = vmatprep.mubr.bf16.mxu1 %v1062_v32 }
 0x2cd   :  { %v1017_v36 = vpack.c.bf16 %v960_v35, %v956_v31  ;;  %v962_v37 = vpop.f32.mrb[51].mxu0  ;;  %1263 = vmatmul.mubr.bf16.vlgmr.msra.gmra.mrb[32].mxu1 %v1061_v33 }
 0x2ce   :  { %v1018_v38 = vpack.c.bf16 %v962_v37, %v958_v34 }
 0x2cf   :  { %v1047_v40 = vadd.bf16 %v2034_v56, %v1017_v36 }
 0x2d0   :  { %v1048_v42 = vadd.bf16 %v2037_v58, %v1018_v38 }
 0x2d1   :  { %v1063_v19 = vmax.bf16 %v1647_v0, %v1047_v40 }
 0x2d2   :  { %v966_v43 = vpop.f32.mrb[52].mxu0  ;;  %v1064_v44 = vmax.bf16 %v1647_v0, %v1048_v42 }
 0x2d3   :  { %v968_v45 = vpop.f32.mrb[53].mxu0 }
 0x2d4   :  { %v970_v21 = vpop.f32.mrb[54].mxu0  ;;  %1270 = vmatprep.mubr.bf16.mxu1 %v1064_v44 }
 0x2d5   :  { %v1019_v46 = vpack.c.bf16 %v970_v21, %v966_v43  ;;  %v972_v47 = vpop.f32.mrb[55].mxu0  ;;  %1271 = vmatmul.mubr.bf16.gmra.mrb[36].mxu1 %v1063_v19 }
 0x2d6   :  { %v1020_v48 = vpack.c.bf16 %v972_v47, %v968_v45 }
 0x2d7   :  { %v1049_v49 = vadd.bf16 %v2034_v56, %v1019_v46 }
 0x2d8   :  { %v1050_v50 = vadd.bf16 %v2037_v58, %v1020_v48 }
 0x2d9   :  { %v1065_v54 = vmax.bf16 %v1647_v0, %v1049_v49 }
 0x2da   :  { %v976_v51 = vpop.f32.mrb[56].mxu0  ;;  %v1066_v52 = vmax.bf16 %v1647_v0, %v1050_v50 }
 0x2db   :  { %v978_v53 = vpop.f32.mrb[57].mxu0 }
 0x2dc   :  { %v980_v55 = vpop.f32.mrb[58].mxu0  ;;  %1278 = vmatprep.mubr.bf16.mxu1 %v1066_v52 }
 0x2dd   :  { %v1021_v57 = vpack.c.bf16 %v980_v55, %v976_v51  ;;  %v982_v59 = vpop.f32.mrb[59].mxu0  ;;  %1279 = vmatmul.mubr.bf16.gmra.mrb[40].mxu1 %v1065_v54 }
 0x2de   :  { %v1022_v60 = vpack.c.bf16 %v982_v59, %v978_v53 }
 0x2df   :  { %v1051_v61 = vadd.bf16 %v2034_v56, %v1021_v57 }
 0x2e0   :  { %v1052_v62 = vadd.bf16 %v2037_v58, %v1022_v60 }
 0x2e1   :  { %v1067_v41 = vmax.bf16 %v1647_v0, %v1051_v61 }
 0x2e2   :  { %v986_v27 = vpop.f32.mrb[60].mxu0  ;;  %v1068_v63 = vmax.bf16 %v1647_v0, %v1052_v62 }
 0x2e3   :  { %v988_v39 = vpop.f32.mrb[61].mxu0 }
 0x2e4   :  { %v990_v1 = vpop.f32.mrb[62].mxu0  ;;  %1286 = vmatprep.mubr.bf16.mxu1 %v1068_v63 }
 0x2e5   :  { %v1023_v2 = vpack.c.bf16 %v990_v1, %v986_v27  ;;  %v992_v3 = vpop.f32.mrb[63].mxu0  ;;  %1287 = vmatmul.mubr.bf16.gmra.mrb[44].mxu1 %v1067_v41 }
 0x2e6   :  { %v1024_v4 = vpack.c.bf16 %v992_v3, %v988_v39 }
 0x2e7   :  { %v1053_v25 = vadd.bf16 %v2034_v56, %v1023_v2 }
 0x2e8   :  { %v1054_v5 = vadd.bf16 %v2037_v58, %v1024_v4 }
 0x2e9   :  { %v1069_v7 = vmax.bf16 %v1647_v0, %v1053_v25 }
 0x2ea   :  { %v1070_v6 = vmax.bf16 %v1647_v0, %v1054_v5 }
 0x2ec   :  { %1294 = vmatprep.mubr.bf16.mxu1 %v1070_v6 }
 0x2ed   :  { %1295 = vmatmul.mubr.bf16.gmra.mrb[48].mxu1 %v1069_v7 }
 0x388   :  { %v1434_v8 = vpop.f32.mrb[64].mxu0 }
 0x389   :  { %v1435_v10 = vpop.f32.mrb[65].mxu0 }
 0x38a   :  { %v1436_v11 = vadd.f32 %v1435_v10, %v1434_v8  ;;  %v1437_v12 = vpop.f32.mrb[66].mxu0 }
 0x38b   :  { %v1438_v13 = vpop.f32.mrb[67].mxu0 }
 0x38c   :  { %v1241_v56 = vadd.f32 %v1436_v11, %v2074_v9  ;;  %v1439_v58 = vadd.f32 %v1438_v13, %v1437_v12 }
 0x38e   :  { %1304 = vst.msk [vmem:[%s2165_s9] sm:$0xff] %vm1303_vm1, %v1241_v56  ;;  %v1244_v0 = vadd.f32 %v1439_v58, %v2074_v9 }
 0x390   :  { %1305 = vst.msk [vmem:[%s2165_s9 + $0x8] sm:$0xff] %vm1303_vm1, %v1244_v0  ;;  %v1440_v14 = vpop.f32.mrb[68].mxu0 }
 0x391   :  { %v1441_v15 = vpop.f32.mrb[69].mxu0 }
 0x392   :  { %v1442_v16 = vadd.f32 %v1441_v15, %v1440_v14  ;;  %v1443_v17 = vpop.f32.mrb[70].mxu0 }
 0x393   :  { %v1444_v18 = vpop.f32.mrb[71].mxu0 }
 0x394   :  { %v1249_v20 = vadd.f32 %v1442_v16, %v2074_v9  ;;  %v1445_v22 = vadd.f32 %v1444_v18, %v1443_v17 }
 0x396   :  { %1306 = vst.msk [vmem:[%s2165_s9 + $0x10] sm:$0xff] %vm1303_vm1, %v1249_v20  ;;  %v1252_v23 = vadd.f32 %v1445_v22, %v2074_v9 }
 0x398   :  { %1307 = vst.msk [vmem:[%s2165_s9 + $0x18] sm:$0xff] %vm1303_vm1, %v1252_v23  ;;  %v1446_v24 = vpop.f32.mrb[72].mxu0 }
 0x399   :  { %v1447_v26 = vpop.f32.mrb[73].mxu0 }
 0x39a   :  { %v1448_v28 = vadd.f32 %v1447_v26, %v1446_v24  ;;  %v1449_v29 = vpop.f32.mrb[74].mxu0 }
 0x39b   :  { %v1450_v30 = vpop.f32.mrb[75].mxu0 }
 0x39c   :  { %v1257_v31 = vadd.f32 %v1448_v28, %v2074_v9  ;;  %v1451_v32 = vadd.f32 %v1450_v30, %v1449_v29 }
 0x39e   :  { %1308 = vst.msk [vmem:[%s2165_s9 + $0x20] sm:$0xff] %vm1303_vm1, %v1257_v31  ;;  %v1260_v33 = vadd.f32 %v1451_v32, %v2074_v9 }
 0x3a0   :  { %1309 = vst.msk [vmem:[%s2165_s9 + $0x28] sm:$0xff] %vm1303_vm1, %v1260_v33  ;;  %v1452_v34 = vpop.f32.mrb[32].mxu1 }
 0x3a1   :  { %v1453_v35 = vpop.f32.mrb[33].mxu1 }
 0x3a2   :  { %v1454_v36 = vadd.f32 %v1453_v35, %v1452_v34  ;;  %v1455_v37 = vpop.f32.mrb[34].mxu1 }
 0x3a3   :  { %v1456_v38 = vpop.f32.mrb[35].mxu1 }
 0x3a4   :  { %v1265_v40 = vadd.f32 %v1454_v36, %v2074_v9  ;;  %v1457_v42 = vadd.f32 %v1456_v38, %v1455_v37 }
 0x3a6   :  { %1310 = vst.msk [vmem:[%s2165_s9 + $0x30] sm:$0xff] %vm1303_vm1, %v1265_v40  ;;  %v1268_v43 = vadd.f32 %v1457_v42, %v2074_v9 }
 0x3a8   :  { %1311 = vst.msk [vmem:[%s2165_s9 + $0x38] sm:$0xff] %vm1303_vm1, %v1268_v43  ;;  %v1458_v44 = vpop.f32.mrb[36].mxu1 }
 0x3a9   :  { %v1459_v45 = vpop.f32.mrb[37].mxu1 }
 0x3aa   :  { %v1460_v19 = vadd.f32 %v1459_v45, %v1458_v44  ;;  %v1461_v21 = vpop.f32.mrb[38].mxu1 }
 0x3ab   :  { %v1462_v46 = vpop.f32.mrb[39].mxu1 }
 0x3ac   :  { %v1273_v47 = vadd.f32 %v1460_v19, %v2074_v9  ;;  %v1463_v48 = vadd.f32 %v1462_v46, %v1461_v21 }
 0x3ae   :  { %1312 = vst.msk [vmem:[%s2165_s9 + $0x40] sm:$0xff] %vm1303_vm1, %v1273_v47  ;;  %v1276_v49 = vadd.f32 %v1463_v48, %v2074_v9 }
 0x3b0   :  { %1313 = vst.msk [vmem:[%s2165_s9 + $0x48] sm:$0xff] %vm1303_vm1, %v1276_v49  ;;  %v1464_v50 = vpop.f32.mrb[40].mxu1 }
 0x3b1   :  { %v1465_v51 = vpop.f32.mrb[41].mxu1 }
 0x3b2   :  { %v1466_v52 = vadd.f32 %v1465_v51, %v1464_v50  ;;  %v1467_v53 = vpop.f32.mrb[42].mxu1 }
 0x3b3   :  { %v1468_v54 = vpop.f32.mrb[43].mxu1 }
 0x3b4   :  { %v1281_v55 = vadd.f32 %v1466_v52, %v2074_v9  ;;  %v1469_v57 = vadd.f32 %v1468_v54, %v1467_v53 }
 0x3b6   :  { %1314 = vst.msk [vmem:[%s2165_s9 + $0x50] sm:$0xff] %vm1303_vm1, %v1281_v55  ;;  %v1284_v59 = vadd.f32 %v1469_v57, %v2074_v9 }
 0x3b8   :  { %1315 = vst.msk [vmem:[%s2165_s9 + $0x58] sm:$0xff] %vm1303_vm1, %v1284_v59  ;;  %v1470_v60 = vpop.f32.mrb[44].mxu1 }
 0x3b9   :  { %v1471_v61 = vpop.f32.mrb[45].mxu1 }
 0x3ba   :  { %v1472_v62 = vadd.f32 %v1471_v61, %v1470_v60  ;;  %v1473_v27 = vpop.f32.mrb[46].mxu1 }
 0x3bb   :  { %v1474_v63 = vpop.f32.mrb[47].mxu1 }
 0x3bc   :  { %v1289_v39 = vadd.f32 %v1472_v62, %v2074_v9  ;;  %v1475_v41 = vadd.f32 %v1474_v63, %v1473_v27 }
 0x3be   :  { %1316 = vst.msk [vmem:[%s2165_s9 + $0x60] sm:$0xff] %vm1303_vm1, %v1289_v39  ;;  %v1292_v1 = vadd.f32 %v1475_v41, %v2074_v9 }
 0x3c0   :  { %1317 = vst.msk [vmem:[%s2165_s9 + $0x68] sm:$0xff] %vm1303_vm1, %v1292_v1  ;;  %v1476_v2 = vpop.f32.mrb[48].mxu1 }
 0x3c1   :  { %v1477_v3 = vpop.f32.mrb[49].mxu1 }
 0x3c2   :  { %v1478_v4 = vadd.f32 %v1477_v3, %v1476_v2  ;;  %v1479_v25 = vpop.f32.mrb[50].mxu1 }
 0x3c3   :  { %v1480_v5 = vpop.f32.mrb[51].mxu1 }
 0x3c4   :  { %v1297_v6 = vadd.f32 %v1478_v4, %v2074_v9  ;;  %v1481_v7 = vadd.f32 %v1480_v5, %v1479_v25 }
 0x3c6   :  { %1318 = vst.msk [vmem:[%s2165_s9 + $0x70] sm:$0xff] %vm1303_vm1, %v1297_v6  ;;  %v1300_v8 = vadd.f32 %v1481_v7, %v2074_v9 }
 0x3c8   :  { %1319 = vst.msk [vmem:[%s2165_s9 + $0x78] sm:$0xff] %vm1303_vm1, %v1300_v8 }
 0x3c9   :  { %1324 = vsyncpa [#allocation3], 1 }

</bundles_post_ra>
